<compile_context>
chip_gen: v7x
topology: tpu7x:2x2x1
jax: 0.10.0
libtpu: 0.0.40
codegen_flags: <defaults>
</compile_context>

<pallas_src>
import functools
import math

import jax
import jax.numpy as jnp
from jax import lax
from jax.experimental import pallas as pl
from jax.experimental.pallas import tpu as pltpu


# ----------------------------------------------------------------------------
# Hardware / tile-size helpers
# ----------------------------------------------------------------------------
def _vmem_capacity_bytes():
    try:
        fn = getattr(pltpu, "get_tpu_info", None)
        if fn is not None:
            info = fn()
            v = getattr(info, "vmem_capacity_bytes", None)
            if isinstance(v, int) and v > 0:
                return v
    except Exception:
        pass
    return 64 * 1024 * 1024  # conservative: v7x physical VMEM


def _pick_tile(dim, target, step):
    """Largest multiple of `step` that divides `dim` and is <= target (None if none)."""
    if dim % step != 0:
        return None
    t = min(target, dim)
    t -= t % step
    while t >= step:
        if dim % t == 0:
            return t
        t -= step
    return None


def _row_tiles(length):
    """Candidate row-tile sizes: multiples of 8 dividing `length`, plus the full dim."""
    cands = [d for d in range(8, length + 1, 8) if length % d == 0]
    if length not in cands:
        cands.append(length)
    return cands


def _head_blocks(num_heads, head_dim, allow_full):
    """Head-block sizes hb with hb | H and hb*Dh lane-dense (multiple of 128),
    or hb == H when the input's last dim is exactly E (full-dim block allowed)."""
    out = [h for h in range(1, num_heads + 1)
           if num_heads % h == 0
           and ((h * head_dim) % 128 == 0 or (allow_full and h == num_heads))]
    return out or [num_heads]


def _choose_w_tiles(B, H, Dh, Lq, Lk, allow_full, budget):
    best = None
    for hb in _head_blocks(H, Dh, allow_full):
        cb = hb * Dh
        for tq in _row_tiles(Lq):
            est = (4 * tq * B * cb * 2                 # q + o blocks, 2 buffers, bf16
                   + 4 * Lk * B * cb * 2               # k + v blocks, 2 buffers, bf16
                   + 2 * B * tq * Lk * 4               # averaged-weights block (f32)
                   + 3 * B * tq * Lk * 4               # softmax temporaries
                   + hb * B * tq * max(Dh, 128) * 4)   # per-head PV outputs
            if est > budget:
                continue
            key = (min(tq, 256), min(cb, 512), tq, cb)
            if best is None or key > best[0]:
                best = (key, hb, tq)
    if best is None:
        return _head_blocks(H, Dh, allow_full)[0], _row_tiles(Lq)[0]
    return best[1], best[2]


def _choose_flash_tiles(B, H, Dh, Lq, Lk, allow_full, budget):
    best = None
    for hb in _head_blocks(H, Dh, allow_full):
        cb = hb * Dh
        for tq in _row_tiles(Lq):
            for tk in _row_tiles(Lk):
                est = (4 * tq * B * cb * 2                 # q + o blocks
                       + 4 * tk * B * cb * 2               # k + v blocks
                       + 2 * hb * B * tq * 128 * 4         # m / l scratch (lane padded)
                       + hb * B * tq * max(Dh, 128) * 4    # acc scratch
                       + 3 * B * tq * tk * 4               # score temporaries
                       + hb * B * tq * max(Dh, 128) * 4)   # output assembly
                if est > budget:
                    continue
                key = (min(tq, 512), min(tk, 512), min(cb, 512), tq, tk)
                if best is None or key > best[0]:
                    best = (key, hb, tq, tk)
    if best is None:
        return (_head_blocks(H, Dh, allow_full)[0],
                _row_tiles(Lq)[0], _row_tiles(Lk)[0])
    return best[1], best[2], best[3]


# ----------------------------------------------------------------------------
# Kernel 1: tiled linear  y = x @ w.T + b   (w kept in PyTorch (N, K) layout)
# ----------------------------------------------------------------------------
def _linear_kernel(x_ref, w_ref, b_ref, o_ref, acc_ref):
    k = pl.program_id(2)

    @pl.when(k == 0)
    def _init():
        acc_ref[...] = jnp.zeros_like(acc_ref)

    acc_ref[...] += lax.dot_general(
        x_ref[...], w_ref[...],
        dimension_numbers=(((1,), (1,)), ((), ())),   # contract K; no transpose
        preferred_element_type=jnp.float32)

    @pl.when(k == pl.num_programs(2) - 1)
    def _store():
        o_ref[...] = (acc_ref[...] + b_ref[...]).astype(o_ref.dtype)


def pallas_linear(x, w, b, *, tm=512, tn=512, tk=512,
                  compute_dtype=jnp.bfloat16, out_dtype=jnp.float32):
    """x: (M, K), w: (N, K) (PyTorch nn.Linear layout), b: (N,) -> (M, N)."""
    M, K = x.shape
    N = w.shape[0]
    if b is None:
        b = jnp.zeros((N,), jnp.float32)

    tn = _pick_tile(N, tn, 256) or _pick_tile(N, tn, 128) or N
    tk = _pick_tile(K, tk, 128) or K

    tm_sel = _pick_tile(M, tm, 8)
    pad = 0
    Mp = M
    if tm_sel is None:
        # ragged M: pad to a lane-friendly multiple instead of one huge block
        Mp = ((M + 127) // 128) * 128
        pad = Mp - M
        x = jnp.pad(x, ((0, pad), (0, 0)))
        tm_sel = _pick_tile(Mp, tm, 8)
    tm = tm_sel

    out = pl.pallas_call(
        _linear_kernel,
        out_shape=jax.ShapeDtypeStruct((Mp, N), out_dtype),
        grid_spec=pltpu.PrefetchScalarGridSpec(
            num_scalar_prefetch=0,
            grid=(Mp // tm, N // tn, K // tk),
            in_specs=[
                pl.BlockSpec((tm, tk), lambda i, j, k: (i, k)),
                pl.BlockSpec((tn, tk), lambda i, j, k: (j, k)),
                pl.BlockSpec((1, tn), lambda i, j, k: (0, j)),
            ],
            out_specs=pl.BlockSpec((tm, tn), lambda i, j, k: (i, j)),
            scratch_shapes=[pltpu.VMEM((tm, tn), jnp.float32)],
        ),
        compiler_params=pltpu.CompilerParams(
            dimension_semantics=("parallel", "parallel", "arbitrary")),
    )(x.astype(compute_dtype), w.astype(compute_dtype),
      b.reshape(1, N).astype(jnp.float32))
    if pad:
        out = out[:M]
    return out


# ----------------------------------------------------------------------------
# Kernel 2a: attention with head-averaged weights (q-tiled, full Lk per step)
# ----------------------------------------------------------------------------
def _attn_weights_kernel(q_ref, k_ref, v_ref, o_ref, w_ref, *,
                         scale, head_dim, hb, inv_heads):
    # q_ref: (tq, B, hb*Dh)   k_ref/v_ref: (Lk, B, hb*Dh)
    # o_ref: (tq, B, hb*Dh)   w_ref: (B, tq, Lk) accumulated across head blocks
    hblk = pl.program_id(1)

    @pl.when(hblk == 0)
    def _init():
        w_ref[...] = jnp.zeros_like(w_ref)

    # fold the 1/sqrt(Dh) scale into q (Dh-sized multiply, not Lq*Lk-sized)
    q = (q_ref[...].astype(jnp.float32) * scale).astype(q_ref.dtype)
    k = k_ref[...]
    v = v_ref[...]
    B = q.shape[1]

    w_sum = None
    outs = []
    for h in range(hb):
        sl = slice(h * head_dim, (h + 1) * head_dim)
        qh, kh, vh = q[:, :, sl], k[:, :, sl], v[:, :, sl]
        s = lax.dot_general(qh, kh, (((2,), (2,)), ((1,), (1,))),
                            preferred_element_type=jnp.float32)       # (B, tq, Lk)
        s = s - jnp.max(s, axis=-1, keepdims=True)
        e = jnp.exp(s)
        p = e / jnp.sum(e, axis=-1, keepdims=True)   # exact: p is returned as weights
        w_sum = p if w_sum is None else w_sum + p
        outs.append(lax.dot_general(p.astype(vh.dtype), vh,
                                    (((2,), (0,)), ((0,), (1,))),
                                    preferred_element_type=jnp.float32))  # (B, tq, Dh)

    o_all = outs[0] if hb == 1 else jnp.concatenate(outs, axis=-1)     # (B, tq, hb*Dh)
    for b in range(B):   # small in-VMEM relayout; HBM block write stays lane-dense
        o_ref[:, b, :] = o_all[b].astype(o_ref.dtype)

    w_ref[...] += w_sum

    @pl.when(hblk == pl.num_programs(1) - 1)
    def _finalize():
        w_ref[...] *= inv_heads


# ----------------------------------------------------------------------------
# Kernel 2b: flash-style attention (no weights): q/head/kv-tiled online softmax
# ----------------------------------------------------------------------------
def _attn_flash_kernel(q_ref, k_ref, v_ref, o_ref, m_ref, l_ref, acc_ref, *,
                       scale, head_dim, hb):
    # q_ref: (tq, B, hb*Dh)   k_ref/v_ref: (tk, B, hb*Dh)   o_ref: (tq, B, hb*Dh)
    # m_ref/l_ref: (hb, B, tq, 1) f32     acc_ref: (hb, B, tq, Dh) f32
    kv = pl.program_id(2)

    @pl.when(kv == 0)
    def _init():
        m_ref[...] = jnp.full_like(m_ref, -jnp.inf)
        l_ref[...] = jnp.zeros_like(l_ref)
        acc_ref[...] = jnp.zeros_like(acc_ref)

    q = (q_ref[...].astype(jnp.float32) * scale).astype(q_ref.dtype)
    k = k_ref[...]
    v = v_ref[...]
    B = q.shape[1]

    for h in range(hb):
        sl = slice(h * head_dim, (h + 1) * head_dim)
        qh, kh, vh = q[:, :, sl], k[:, :, sl], v[:, :, sl]
        s = lax.dot_general(qh, kh, (((2,), (2,)), ((1,), (1,))),
                            preferred_element_type=jnp.float32)       # (B, tq, tk)
        m_prev = m_ref[h]
        m_new = jnp.maximum(m_prev, jnp.max(s, axis=-1, keepdims=True))
        alpha = jnp.exp(m_prev - m_new)
        p = jnp.exp(s - m_new)
        l_ref[h] = alpha * l_ref[h] + jnp.sum(p, axis=-1, keepdims=True)
        acc_ref[h] = alpha * acc_ref[h] + lax.dot_general(
            p.astype(vh.dtype), vh, (((2,), (0,)), ((0,), (1,))),
            preferred_element_type=jnp.float32)                        # (B, tq, Dh)
        m_ref[h] = m_new

    @pl.when(kv == pl.num_programs(2) - 1)
    def _store():
        outs = [acc_ref[h] * pl.reciprocal(l_ref[h], approx=True) for h in range(hb)]
        o_all = outs[0] if hb == 1 else jnp.concatenate(outs, axis=-1)
        for b in range(B):
            o_ref[:, b, :] = o_all[b].astype(o_ref.dtype)


# ----------------------------------------------------------------------------
# Attention wrapper: head columns selected via BlockSpec index maps (no slices)
# ----------------------------------------------------------------------------
def pallas_attention(q_arr, k_arr, v_arr, *, col_offsets, num_heads, head_dim,
                     need_weights=True, compute_dtype=jnp.bfloat16,
                     tile_override=None):
    """q_arr/k_arr/v_arr: (L, B, C) arrays; head h of q/k/v lives in columns
    col_offsets[i] + [h*Dh, (h+1)*Dh).  For packed self-attention all three are
    the same (L, B, 3E) array with offsets (0, E, 2E).

    Returns attn_out (Lq, B, E) in compute_dtype and, if need_weights, the
    head-averaged probabilities (B, Lq, Lk) in f32."""
    H, Dh = num_heads, head_dim
    E = H * Dh
    Lq, B, _ = q_arr.shape
    Lk = k_arr.shape[0]
    scale = 1.0 / math.sqrt(Dh)

    q_arr = q_arr if q_arr.dtype == compute_dtype else q_arr.astype(compute_dtype)
    k_arr = k_arr if k_arr.dtype == compute_dtype else k_arr.astype(compute_dtype)
    v_arr = v_arr if v_arr.dtype == compute_dtype else v_arr.astype(compute_dtype)

    allow_full = all(a.shape[-1] == E for a in (q_arr, k_arr, v_arr))
    vmem_cap = _vmem_capacity_bytes()
    budget = int(vmem_cap * 0.4)
    vmem_limit = int(vmem_cap * 0.75)

    if need_weights:
        if tile_override is not None:
            hb, tq = tile_override[0], tile_override[1]
        else:
            hb, tq = _choose_w_tiles(B, H, Dh, Lq, Lk, allow_full, budget)
        cb = hb * Dh
        nhb = H // hb
        offs = [o // cb for o in col_offsets]

        kernel = functools.partial(_attn_weights_kernel, scale=scale,
                                   head_dim=Dh, hb=hb, inv_heads=1.0 / H)
        attn_out, attn_w = pl.pallas_call(
            kernel,
            out_shape=(jax.ShapeDtypeStruct((Lq, B, E), compute_dtype),
                       jax.ShapeDtypeStruct((B, Lq, Lk), jnp.float32)),
            grid_spec=pltpu.PrefetchScalarGridSpec(
                num_scalar_prefetch=0,
                grid=(Lq // tq, nhb),
                in_specs=[
                    pl.BlockSpec((tq, B, cb), lambda qt, hi, o=offs[0]: (qt, 0, o + hi)),
                    pl.BlockSpec((Lk, B, cb), lambda qt, hi, o=offs[1]: (0, 0, o + hi)),
                    pl.BlockSpec((Lk, B, cb), lambda qt, hi, o=offs[2]: (0, 0, o + hi)),
                ],
                out_specs=[
                    pl.BlockSpec((tq, B, cb), lambda qt, hi: (qt, 0, hi)),
                    pl.BlockSpec((B, tq, Lk), lambda qt, hi: (0, qt, 0)),
                ],
            ),
            compiler_params=pltpu.CompilerParams(
                dimension_semantics=("parallel", "arbitrary"),
                vmem_limit_bytes=vmem_limit),
        )(q_arr, k_arr, v_arr)
        return attn_out, attn_w

    if tile_override is not None:
        hb, tq, tk = tile_override
    else:
        hb, tq, tk = _choose_flash_tiles(B, H, Dh, Lq, Lk, allow_full, budget)
    cb = hb * Dh
    nhb = H // hb
    offs = [o // cb for o in col_offsets]

    kernel = functools.partial(_attn_flash_kernel, scale=scale, head_dim=Dh, hb=hb)
    attn_out = pl.pallas_call(
        kernel,
        out_shape=jax.ShapeDtypeStruct((Lq, B, E), compute_dtype),
        grid_spec=pltpu.PrefetchScalarGridSpec(
            num_scalar_prefetch=0,
            grid=(Lq // tq, nhb, Lk // tk),
            in_specs=[
                pl.BlockSpec((tq, B, cb), lambda qt, hi, kv, o=offs[0]: (qt, 0, o + hi)),
                pl.BlockSpec((tk, B, cb), lambda qt, hi, kv, o=offs[1]: (kv, 0, o + hi)),
                pl.BlockSpec((tk, B, cb), lambda qt, hi, kv, o=offs[2]: (kv, 0, o + hi)),
            ],
            out_specs=pl.BlockSpec((tq, B, cb), lambda qt, hi, kv: (qt, 0, hi)),
            scratch_shapes=[
                pltpu.VMEM((hb, B, tq, 1), jnp.float32),
                pltpu.VMEM((hb, B, tq, 1), jnp.float32),
                pltpu.VMEM((hb, B, tq, Dh), jnp.float32),
            ],
        ),
        compiler_params=pltpu.CompilerParams(
            dimension_semantics=("parallel", "parallel", "arbitrary"),
            vmem_limit_bytes=vmem_limit),
    )(q_arr, k_arr, v_arr)
    return attn_out, None


# ----------------------------------------------------------------------------
# Full MultiheadAttention forward (self/cross attention, no masks, no dropout)
# ----------------------------------------------------------------------------
def multihead_attention_forward(
    query, key, value, num_heads,
    in_proj_weight, in_proj_bias,
    out_proj_weight, out_proj_bias,
    need_weights=True,
):
    # TODO(synk): key_padding_mask / attn_mask / dropout paths not implemented (None / 0.0).
    tgt_len, bsz, E = query.shape
    src_len = key.shape[0]
    head_dim = E // num_heads

    # NOTE: the self-attention fast path is keyed on Python object identity,
    # matching PyTorch's `q is k is v` check (identical numerics either way).
    if (query is key) and (key is value):
        # self-attention: one fused GEMM for the packed (3E, E) weight — x read once
        qkv = pallas_linear(query.reshape(-1, E), in_proj_weight, in_proj_bias,
                            out_dtype=jnp.bfloat16).reshape(tgt_len, bsz, 3 * E)
        if E % 128 == 0:
            # packed path: no q/k/v column-slice copies — head columns selected
            # directly by the attention BlockSpec index maps
            q_arr = k_arr = v_arr = qkv
            col_offsets = (0, E, 2 * E)
        else:
            # tiny-model fallback (E not lane-aligned): slice once (small tensors)
            q_arr = qkv[:, :, :E]
            k_arr = qkv[:, :, E:2 * E]
            v_arr = qkv[:, :, 2 * E:]
            col_offsets = (0, 0, 0)
    else:
        w_q, w_k, w_v = (in_proj_weight[:E], in_proj_weight[E:2 * E],
                         in_proj_weight[2 * E:])
        if in_proj_bias is None:
            b_q = b_k = b_v = None
        else:
            b_q, b_k, b_v = (in_proj_bias[:E], in_proj_bias[E:2 * E],
                             in_proj_bias[2 * E:])
        q_arr = pallas_linear(query.reshape(-1, E), w_q, b_q,
                              out_dtype=jnp.bfloat16).reshape(tgt_len, bsz, E)
        k_arr = pallas_linear(key.reshape(-1, E), w_k, b_k,
                              out_dtype=jnp.bfloat16).reshape(src_len, bsz, E)
        v_arr = pallas_linear(value.reshape(-1, E), w_v, b_v,
                              out_dtype=jnp.bfloat16).reshape(src_len, bsz, E)
        col_offsets = (0, 0, 0)

    attn_out, attn_w = pallas_attention(
        q_arr, k_arr, v_arr, col_offsets=col_offsets,
        num_heads=num_heads, head_dim=head_dim, need_weights=need_weights)

    # attn_out is already (Lq, B, E): its rows feed the out projection directly
    out = pallas_linear(attn_out.reshape(tgt_len * bsz, E),
                        out_proj_weight, out_proj_bias,
                        out_dtype=jnp.float32).reshape(tgt_len, bsz, E)
    return out, attn_w


# ----------------------------------------------------------------------------
# Parameter init (deterministic, matches module shapes; not a checkpoint load)
# ----------------------------------------------------------------------------
def init_params(key, embed_dim):
    k1, k2 = jax.random.split(key)
    limit_in = math.sqrt(6.0 / (3 * embed_dim + embed_dim))           # xavier_uniform
    in_proj_weight = jax.random.uniform(
        k1, (3 * embed_dim, embed_dim), jnp.float32, -limit_in, limit_in)
    in_proj_bias = jnp.zeros((3 * embed_dim,), jnp.float32)
    limit_out = math.sqrt(1.0 / embed_dim)
    out_proj_weight = jax.random.uniform(
        k2, (embed_dim, embed_dim), jnp.float32, -limit_out, limit_out)
    out_proj_bias = jnp.zeros((embed_dim,), jnp.float32)
    return in_proj_weight, in_proj_bias, out_proj_weight, out_proj_bias


# ----------------------------------------------------------------------------
# Pure-JAX reference (PyTorch semantics) for a sanity tolerance check
# ----------------------------------------------------------------------------
def _reference_mha(x_q, x_k, x_v, num_heads, in_w, in_b, out_w, out_b):
    Lq, B, E = x_q.shape
    Lk = x_k.shape[0]
    Dh = E // num_heads
    q = x_q.reshape(Lq * B, E) @ in_w[:E].T + in_b[:E]
    k = x_k.reshape(Lk * B, E) @ in_w[E:2 * E].T + in_b[E:2 * E]
    v = x_v.reshape(Lk * B, E) @ in_w[2 * E:].T + in_b[2 * E:]

    def split(t, L):
        return t.reshape(L, B, num_heads, Dh).transpose(1, 2, 0, 3)   # (B, H, L, Dh)

    q, k, v = split(q, Lq), split(k, Lk), split(v, Lk)
    s = jnp.einsum("bhqd,bhkd->bhqk", q / math.sqrt(Dh), k)
    p = jax.nn.softmax(s, axis=-1)
    o = jnp.einsum("bhqk,bhkd->bhqd", p, v)
    o = o.transpose(2, 0, 1, 3).reshape(Lq, B, E)
    out = o.reshape(Lq * B, E) @ out_w.T + out_b
    return out.reshape(Lq, B, E), jnp.mean(p, axis=1)


if __name__ == "__main__":
    def run_case(embed_dim, num_heads, seq, bsz):
        kx, kp = jax.random.split(jax.random.PRNGKey(0))
        x = jax.random.normal(kx, (seq, bsz, embed_dim), jnp.float32)
        params = init_params(kp, embed_dim)
        in_w, in_b, out_w, out_b = params

        out, w = multihead_attention_forward(x, x, x, num_heads, in_w, in_b,
                                             out_w, out_b, need_weights=True)
        jax.block_until_ready((out, w))
        assert out.shape == (seq, bsz, embed_dim)
        assert w.shape == (bsz, seq, seq)

        out_ref, w_ref = _reference_mha(x, x, x, num_heads, in_w, in_b, out_w, out_b)
        assert float(jnp.max(jnp.abs(out - out_ref))) < 0.1
        assert float(jnp.max(jnp.abs(w - w_ref))) < 0.05

        out_nw, w_none = multihead_attention_forward(x, x, x, num_heads, in_w, in_b,
                                                     out_w, out_b, need_weights=False)
        jax.block_until_ready(out_nw)
        assert w_none is None
        assert float(jnp.max(jnp.abs(out_nw - out_ref))) < 0.1
        return x, params

    # 1) tiny config (E not lane aligned -> fallback slice path), self-attention
    run_case(32, 4, 8, 2)

    # 2) lane-aligned config exercising the packed-QKV index-map path
    x2, (in_w2, in_b2, out_w2, out_b2) = run_case(256, 4, 16, 2)

    # 3) force multi-tile flash path (q/head/kv tiling) and compare with untiled
    E2, H2, Dh2, L2 = 256, 4, 64, 16
    qkv2 = pallas_linear(x2.reshape(-1, E2), in_w2, in_b2,
                         out_dtype=jnp.bfloat16).reshape(L2, 2, 3 * E2)
    attn_tiled, _ = pallas_attention(qkv2, qkv2, qkv2, col_offsets=(0, E2, 2 * E2),
                                     num_heads=H2, head_dim=Dh2, need_weights=False,
                                     tile_override=(2, 8, 8))
    attn_full, _ = pallas_attention(qkv2, qkv2, qkv2, col_offsets=(0, E2, 2 * E2),
                                    num_heads=H2, head_dim=Dh2, need_weights=False)
    jax.block_until_ready((attn_tiled, attn_full))
    diff = jnp.max(jnp.abs(attn_tiled.astype(jnp.float32)
                           - attn_full.astype(jnp.float32)))
    assert float(diff) < 0.05

    print("KERNEL_OK")
</pallas_src>

<mosaic_0001>
module attributes {stable_mosaic.version = 11 : i64} {
  func.func @_linear_kernel(%arg0: i32, %arg1: i32, %arg2: i32, %arg3: memref<16x32xbf16, #tpu.memory_space<vmem>>, %arg4: memref<96x32xbf16, #tpu.memory_space<vmem>>, %arg5: memref<1x96xf32, #tpu.memory_space<vmem>>, %arg6: memref<16x96xbf16, #tpu.memory_space<vmem>>, %arg7: memref<16x96xf32, #tpu.memory_space<vmem>>) attributes {dimension_semantics = [#tpu.dimension_semantics<parallel>, #tpu.dimension_semantics<parallel>, #tpu.dimension_semantics<arbitrary>], iteration_bounds = array<i64: 1, 1, 1>, scalar_prefetch = 0 : i64, scratch_operands = 1 : i64, tpu.core_type = #tpu.core_type<tc>, window_params = [{transform_indices = @transform_0, window_bounds = array<i64: 16, 32>}, {transform_indices = @transform_1, window_bounds = array<i64: 96, 32>}, {transform_indices = @transform_2, window_bounds = array<i64: 1, 96>}, {transform_indices = @transform_3, window_bounds = array<i64: 16, 96>}]} {
    %c0_i32 = arith.constant 0 : i32
    %0 = arith.cmpi eq, %arg2, %c0_i32 : i32
    %1 = arith.extui %0 : i1 to i32
    %c0_i32_0 = arith.constant 0 : i32
    %2 = arith.cmpi ne, %1, %c0_i32_0 : i32
    scf.if %2 {
      %cst_10 = arith.constant 0.000000e+00 : f32
      %12 = vector.broadcast %cst_10 : f32 to vector<16x96xf32>
      %c0_11 = arith.constant 0 : index
      %c0_12 = arith.constant 0 : index
      %13 = vector.load %arg7[%c0_11, %c0_12] : memref<16x96xf32, #tpu.memory_space<vmem>>, vector<16x96xf32>
      tpu.vector_store %arg7[%c0_11, %c0_12], %12 {strides = array<i32>} : memref<16x96xf32, #tpu.memory_space<vmem>>, vector<16x96xf32>,
    } else {
    }
    %c0 = arith.constant 0 : index
    %c0_1 = arith.constant 0 : index
    %3 = vector.load %arg7[%c0, %c0_1] : memref<16x96xf32, #tpu.memory_space<vmem>>, vector<16x96xf32>
    %c0_2 = arith.constant 0 : index
    %c0_3 = arith.constant 0 : index
    %4 = vector.load %arg3[%c0_2, %c0_3] : memref<16x32xbf16, #tpu.memory_space<vmem>>, vector<16x32xbf16>
    %c0_4 = arith.constant 0 : index
    %c0_5 = arith.constant 0 : index
    %5 = vector.load %arg4[%c0_4, %c0_5] : memref<96x32xbf16, #tpu.memory_space<vmem>>, vector<96x32xbf16>
    %cst = arith.constant dense<0.000000e+00> : vector<16x96xf32>
    %6 = tpu.matmul %4, %5, %cst {dimension_numbers = #tpu.dot_dimension_numbers<[1], [1], [0], [0], [0, 0, 1, 0], [], []>} : vector<16x32xbf16>, vector<96x32xbf16>, vector<16x96xf32> -> vector<16x96xf32>
    %7 = arith.addf %3, %6 : vector<16x96xf32>
    %c0_6 = arith.constant 0 : index
    %c0_7 = arith.constant 0 : index
    %8 = vector.load %arg7[%c0_6, %c0_7] : memref<16x96xf32, #tpu.memory_space<vmem>>, vector<16x96xf32>
    tpu.vector_store %arg7[%c0_6, %c0_7], %7 {strides = array<i32>} : memref<16x96xf32, #tpu.memory_space<vmem>>, vector<16x96xf32>,
    %c0_i32_8 = arith.constant 0 : i32
    %9 = arith.cmpi eq, %arg2, %c0_i32_8 : i32
    %10 = arith.extui %9 : i1 to i32
    %c0_i32_9 = arith.constant 0 : i32
    %11 = arith.cmpi ne, %10, %c0_i32_9 : i32
    scf.if %11 {
      %c0_10 = arith.constant 0 : index
      %c0_11 = arith.constant 0 : index
      %12 = vector.load %arg7[%c0_10, %c0_11] : memref<16x96xf32, #tpu.memory_space<vmem>>, vector<16x96xf32>
      %c0_12 = arith.constant 0 : index
      %c0_13 = arith.constant 0 : index
      %13 = vector.load %arg5[%c0_12, %c0_13] : memref<1x96xf32, #tpu.memory_space<vmem>>, vector<1x96xf32>
      %14 = vector.broadcast %13 : vector<1x96xf32> to vector<16x96xf32>
      %15 = arith.addf %12, %14 : vector<16x96xf32>
      %16 = arith.truncf %15 : vector<16x96xf32> to vector<16x96xbf16>
      %c0_14 = arith.constant 0 : index
      %c0_15 = arith.constant 0 : index
      %17 = vector.load %arg6[%c0_14, %c0_15] : memref<16x96xbf16, #tpu.memory_space<vmem>>, vector<16x96xbf16>
      tpu.vector_store %arg6[%c0_14, %c0_15], %16 {strides = array<i32>} : memref<16x96xbf16, #tpu.memory_space<vmem>>, vector<16x96xbf16>,
    } else {
    }
    return
  }
  func.func @transform_0(%arg0: i32, %arg1: i32, %arg2: i32) -> (i32, i32) {
    %c0_i32 = arith.constant 0 : i32
    return %arg0, %arg2 : i32, i32
  }
  func.func @transform_1(%arg0: i32, %arg1: i32, %arg2: i32) -> (i32, i32) {
    %c0_i32 = arith.constant 0 : i32
    return %arg1, %arg2 : i32, i32
  }
  func.func @transform_2(%arg0: i32, %arg1: i32, %arg2: i32) -> (i32, i32) {
    %c0_i32 = arith.constant 0 : i32
    %c0_i32_0 = arith.constant 0 : i32
    return %c0_i32, %arg1 : i32, i32
  }
  func.func @transform_3(%arg0: i32, %arg1: i32, %arg2: i32) -> (i32, i32) {
    %c0_i32 = arith.constant 0 : i32
    return %arg0, %arg1 : i32, i32
  }
}

</mosaic_0001>

<bundles_post_ra>
// kernel: tpu_custom_call.1
= control target key start
LH: loop header
LB: loop body
LE: loop exit
PB: predicated region body
PF: predicated region fallthrough
CT: control target
= control target key end

     0   :  { %v255_v1 = vmov 0.0   ;;  %vm74_vm0 = vcmask 261120   ;;  %vm256_vm1 = vmmov 0   ;;  %vm20_vm2 = vcmask 785408   ;;  %s327_s0 = inlined_call_operand.vmem [shape: bf16[16,32], index: 0, kind: input, shape index: {}]   ;;  %s328_s1 = inlined_call_operand.vmem [shape: bf16[96,32], index: 1, kind: input, shape index: {}]   ;;  %s329_s2 = inlined_call_operand.vmem [shape: f32[1,96], index: 2, kind: input, shape index: {}]   ;;  %s330_s3 = inlined_call_operand.hbm [shape: bf16[16,96], index: 3, kind: output, shape index: {}]  }
   0x1   :  { %v224_v0 = vld [vmem:[%s328_s1] sm:$0xff]   ;;  %203 = vmatprep.subr.bf16.mxu0 %v255_v1  ;;  %v225_v3 = vld [vmem:[%s328_s1 + $0x8] sm:$0xff]   ;;  %215 = vmatprep.mubr.msk.bf16.mxu0 %vm256_vm1, %v255_v1 }
   0x2   :  { %v79_v2 = vsel %vm74_vm0, %v224_v0, 0 }
   0x3   :  { %204 = vmatpush3.bf16.xpose.msra.mxu0 %v79_v2 }
   0x4   :  { %205 = vmatprep.subr.bf16.mxu0 %v255_v1 }
   0x5   :  { %8 = vsyncpa [#allocation4], 0  ;;  %v82_v4 = vsel %vm74_vm0, %v225_v3, 0  ;;  %21 = vst.msk [vmem:[#allocation2] sm:$0xff] %vm20_vm2, %v255_v1  ;;  %v226_v5 = vld [vmem:[%s328_s1 + $0x10] sm:$0xff]   ;;  %v227_v7 = vld [vmem:[%s328_s1 + $0x18] sm:$0xff]  }
   0x6   :  { %22 = vst.msk [vmem:[#allocation2 + $0x8] sm:$0xff] %vm20_vm2, %v255_v1  ;;  %v85_v6 = vsel %vm74_vm0, %v226_v5, 0  ;;  %v88_v8 = vsel %vm74_vm0, %v227_v7, 0  ;;  %v228_v9 = vld [vmem:[%s328_s1 + $0x20] sm:$0xff]   ;;  %v229_v11 = vld [vmem:[%s328_s1 + $0x28] sm:$0xff]   ;;  %vm164_vm3 = vcmask 781312  }
   0x7   :  { %v91_v10 = vsel %vm74_vm0, %v228_v9, 0  ;;  %v94_v12 = vsel %vm74_vm0, %v229_v11, 0  ;;  %v230_v13 = vld [vmem:[%s327_s0] sm:$0xff]   ;;  %s257_s0 = smov [#allocation3]  }
   0x8   :  { %v191_v22 = vld [vmem:[%s329_s2] ss:$0 sm:$0xff]  ;;  %s172_s27 = sshll.u32 %s257_s0, 4  ;;  %s173_s27 = int_to_ptr.vmem [resolvable:$true] %s172_s27 }
   0x9   :  { %s231_s28 = scalar_lea.vmem %s173_s27, 128  ;;  %p236_p1 = scmp.lt.s32.totalorder %s173_s27, %s173_s27 }
   0xa   :  { %p232_p0 = scmp.ne.s32.totalorder %s173_s27, %s231_s28  ;;  %p237_p2 = scmp.lt.s32.totalorder %s231_s28, %s231_s28 }
   0xb   :  { %206 = vmatpush3.bf16.xpose.msra.mxu0 %v82_v4 }
   0xc   :  { %207 = vmatprep.subr.bf16.mxu0 %v255_v1  ;;  %v23_v14 = vld [vmem:[#allocation2] sm:$0xff]  ;;  %p238_p3 = por %p237_p2, %p236_p1 }
   0xd   :  { %v24_v16 = vld [vmem:[#allocation2 + $0x8] sm:$0xff] }
   0xe   :  { %p239_p4 = pnand %p238_p3, %p232_p0 }
  0x13   :  { %208 = vmatpush3.bf16.xpose.msra.mxu0 %v85_v6 }
  0x14   :  { %209 = vmatprep.subr.bf16.mxu0 %v255_v1 }
  0x1b   :  { %210 = vmatpush3.bf16.xpose.msra.mxu0 %v88_v8 }
  0x1c   :  { %211 = vmatprep.subr.bf16.mxu0 %v255_v1 }
  0x23   :  { %212 = vmatpush3.bf16.xpose.msra.mxu0 %v91_v10 }
  0x24   :  { %213 = vmatprep.subr.bf16.mxu0 %v255_v1 }
  0x2b   :  { %214 = vmatpush3.bf16.xpose.msra.mxu0 %v94_v12 }
  0x32   :  { %216 = vmatmul.mubr.msk.bf16.vlgmr.msra.gmra.mrb[0].mxu0 %vm74_vm0, %v230_v13 }
 0x105   :  { %v130_v15 = vpop.f32.mrb[0].mxu0 }
 0x106   :  { %v137_v17 = vadd.f32 %v130_v15, %v23_v14  ;;  %v217_v18 = vpop.f32.mrb[1].mxu0 }
 0x107   :  { %v133_v19 = vpop.f32.mrb[2].mxu0 }
 0x108   :  { %140 = vst.msk [vmem:[#allocation2] sm:$0xff] %vm20_vm2, %v137_v17  ;;  %v138_v20 = vadd.f32 %v133_v19, %v24_v16  ;;  %v218_v21 = vpop.f32.mrb[3].mxu0 }
 0x10a   :  { %141 = vst.msk [vmem:[#allocation2 + $0x8] sm:$0xff] %vm20_vm2, %v138_v20 }
 0x10f   :  { %v145_v23 = vld [vmem:[#allocation2] sm:$0xff] }
 0x110   :  { %v154_v24 = vadd.f32 %v191_v22, %v145_v23 }
 0x111   :  { %v146_v25 = vld [vmem:[#allocation2 + $0x8] sm:$0xff] }
 0x112   :  { %v155_v26 = vadd.f32 %v191_v22, %v146_v25  ;;  %v194_v27 = vpack.c.bf16 %v154_v24, %v154_v24 }
 0x114   :  { %v195_v28 = vpack.c.bf16 %v155_v26, %v155_v26  ;;  %165 = vst.msk [vmem:[#allocation3] sm:$0xf] %vm164_vm3, %v194_v27 }
 0x116   :  { %166 = vst.msk [vmem:[#allocation3 + $0x4] sm:$0xf] %vm164_vm3, %v195_v28 }
 0x117   :  { %242 = shalt.err (!%p239_p4)
}
 0x118   :  { %s243_s30 = scalar_lea.hbm %s330_s3, 128 }
 0x119   :  { %p244_p5 = scmp.ne.s32.totalorder %s330_s3, %s243_s30  ;;  %p247_p6 = scmp.lt.u32.totalorder %s243_s30, %s330_s3 }
 0x11b   :  { %p249_p7 = pnand %p247_p6, %p244_p5 }
 0x11d   :  { %252 = shalt.err (!%p249_p7)
}
 0x11e   :  { %s258_s8 = smov 64   ;;  %s259_s9 = smov 4  }
 0x11f   :  { %178 = dma.vmem_to_hbm [thread:$0]  %s173_s27, 128, %s330_s3, [#allocation4], %s258_s8, %s258_s8, %s259_s9  }
 0x120   :  { %253 = dma.done.wait [#allocation4], 128  }
 0x121   :  { %254 = vsyncadd [#allocation4], 4294967168 }
 0x122   :  { %182 = vsyncpa [#allocation4], 1 }

</bundles_post_ra>
